<compile_context>
chip_gen: v5e
topology: v5e:2x2
jax: 0.10.0
libtpu: 0.0.40
codegen_flags: <defaults>
</compile_context>

<pallas_src>
import numpy as np
import jax
import jax.numpy as jnp
from jax.experimental import pallas as pl
from jax.experimental.pallas import tpu as pltpu

try:  # fast C implementation if present; pure-numpy fallback below otherwise
    from scipy.optimize import linear_sum_assignment as _scipy_lsa
except Exception:  # pragma: no cover
    _scipy_lsa = None


# ------------------------------- small helpers ------------------------------ #

def _round_up(x, m):
    return ((x + m - 1) // m) * m


def _cdiv(a, b):
    return (a + b - 1) // b


def _vmem_capacity_bytes():
    """Physical VMEM of the local TPU; conservative 64 MiB if unknown."""
    try:
        info = pltpu.get_tpu_info()
        cap = getattr(info, "vmem_capacity_bytes", None)
        if cap:
            return int(cap)
    except Exception:
        pass
    return 64 << 20


def _footprint_bytes(bt, kr, kt, td, itemsize):
    """Corrected VMEM working-set estimate (double-buffer counted once)."""
    ins = 2 * bt * (kr + kt) * td * itemsize   # lhs + rhs blocks, double-buffered
    out = bt * kr * kt * 4                     # resident f32 accumulator block
    scr = bt * (kr + kt) * 128 * 4             # lane-padded norm scratch
    return ins + out + scr


def _choose_tiles(B, K, D, itemsize, vmem_cap):
    """Pick (BT, KR, KT, TD, footprint)."""
    sub = 8 if itemsize >= 4 else 16           # sublane pack: 8 rows f32, 16 bf16
    kr = _round_up(max(K, 1), sub)             # output (pred) rows
    kt = _round_up(max(K, 1), sub)             # target rows (NOT padded to 128)
    d_lane = _round_up(max(D, 1), 128)

    # Per-generation budget: large tiles on 128 MiB parts, conservative on v7x.
    budget = (48 << 20) if vmem_cap >= (96 << 20) else (24 << 20)

    # Batch tile: largest divisor of B in {8,4,2,1} that still leaves >= 2
    # iterations on the "parallel" axis (keeps v7x's 2nd TensorCore busy).
    bt_cands = [c for c in (8, 4, 2, 1) if B % c == 0 and (B < 2 or B // c >= 2)]
    if not bt_cands:
        bt_cands = [1]

    bt, td_sel, done = bt_cands[-1], 128, False
    for cand_bt in bt_cands:
        for cand_td in (4096, 2048, 1024, 512, 256, 128):
            cand_td = min(cand_td, d_lane)
            if _footprint_bytes(cand_bt, kr, kt, cand_td, itemsize) <= budget:
                bt, td_sel, done = cand_bt, cand_td, True
                break
        if done:
            break
    td_sel = min(td_sel, d_lane)
    fp = _footprint_bytes(bt, kr, kt, td_sel, itemsize)
    return bt, kr, kt, td_sel, fp


# ------------------------------- Pallas kernel ------------------------------ #
# Grid: (B // BT, nd).  Axis 0 ("parallel") tiles the batch; axis 1
# ("arbitrary") reduces over D tiles.  The (BT, KR, KT) f32 output block is
# the resident accumulator for the cross term; a2/b2 norms accumulate in small
# VMEM scratch; all broadcasts / transposes / sqrt happen only at d == last.

def _make_cost_kernel(cost_type, D, TD, need_mask):
    def kernel(out_ref, tgt_ref, cost_ref, a2_ref, b2_ref):
        d = pl.program_id(1)

        @pl.when(d == 0)
        def _():
            cost_ref[...] = jnp.zeros_like(cost_ref)
            a2_ref[...] = jnp.zeros_like(a2_ref)
            b2_ref[...] = jnp.zeros_like(b2_ref)

        a = out_ref[...]                       # (BT, KR, TD) source dtype
        b = tgt_ref[...]                       # (BT, KT, TD)
        if need_mask:
            # D is not a multiple of TD: zero the out-of-range tail of the last
            # tile in-kernel instead of materializing padded HBM copies.
            col = jax.lax.broadcasted_iota(jnp.int32, (1, 1, TD), 2)
            valid = (d * TD + col) < D
            zero = jnp.zeros((), a.dtype)
            a = jnp.where(valid, a, zero)
            b = jnp.where(valid, b, zero)

        # Batched MXU matmul contracting the trailing D axis (no b.T copy),
        # f32 accumulation into the resident output block.
        cost_ref[...] += jnp.einsum("bid,bjd->bij", a, b,
                                    preferred_element_type=jnp.float32)
        a32 = a.astype(jnp.float32)
        b32 = b.astype(jnp.float32)
        a2_ref[...] += jnp.sum(a32 * a32, axis=-1, keepdims=True)   # (BT, KR, 1)
        b2_ref[...] += jnp.sum(b32 * b32, axis=-1, keepdims=True)   # (BT, KT, 1)

        @pl.when(d == pl.num_programs(1) - 1)
        def _():
            if cost_type == "L2":
                sq = (a2_ref[...] + jnp.swapaxes(b2_ref[...], -1, -2)
                      - 2.0 * cost_ref[...])
                cost_ref[...] = jnp.sqrt(jnp.maximum(sq, 0.0))
            else:  # cosine: -(sim / (||a|| + eps) / (||b|| + eps))
                eps = 1e-06
                inv_a = 1.0 / (jnp.sqrt(a2_ref[...]) + eps)
                inv_b = 1.0 / (jnp.sqrt(b2_ref[...]) + eps)
                cost_ref[...] = (-1.0 * (cost_ref[...] * inv_a)
                                 * jnp.swapaxes(inv_b, -1, -2))

    return kernel


# ------------------------------- cost wrapper ------------------------------- #

def compute_cost_matrix(outputs, targets, cost_type="L2"):
    """outputs, targets: [B, K, D]  ->  cost: [B, K, K] float32."""
    if cost_type not in ("L2", "cosine"):
        raise ValueError(f"unknown cost_type {cost_type}")

    outputs = jnp.asarray(outputs)
    targets = jnp.asarray(targets)
    B, K, D = outputs.shape
    assert targets.shape == (B, K, D)

    # Keep bf16 on the HBM->VMEM path (halves input traffic); everything else
    # is promoted to f32.  The kernel always accumulates in f32.
    if outputs.dtype not in (jnp.bfloat16, jnp.float32):
        outputs = outputs.astype(jnp.float32)
    if targets.dtype != outputs.dtype:
        targets = targets.astype(outputs.dtype)
    itemsize = jnp.dtype(outputs.dtype).itemsize

    vmem_cap = _vmem_capacity_bytes()
    BT, KR, KT, TD, fp = _choose_tiles(B, K, D, itemsize, vmem_cap)
    nd = _cdiv(D, TD)
    need_mask = (nd * TD != D)

    kernel = _make_cost_kernel(cost_type, D, TD, need_mask)

    # Leave headroom for Mosaic internal scratch (never the full 64 MiB on v7x).
    vmem_limit = int(min(int(0.75 * vmem_cap), max(32 << 20, 2 * fp)))

    cost_p = pl.pallas_call(
        kernel,
        out_shape=jax.ShapeDtypeStruct((B, KR, KT), jnp.float32),
        grid=(B // BT, nd),
        in_specs=[
            pl.BlockSpec((BT, KR, TD), lambda b, d: (b, 0, d)),
            pl.BlockSpec((BT, KT, TD), lambda b, d: (b, 0, d)),
        ],
        out_specs=pl.BlockSpec((BT, KR, KT), lambda b, d: (b, 0, 0)),
        scratch_shapes=[pltpu.VMEM((BT, KR, 1), jnp.float32),
                        pltpu.VMEM((BT, KT, 1), jnp.float32)],
        compiler_params=pltpu.CompilerParams(
            dimension_semantics=("parallel", "arbitrary"),
            vmem_limit_bytes=vmem_limit),
    )(outputs, targets)

    if KR == K and KT == K:
        return cost_p
    return cost_p[:, :K, :K]


# -------------------- host-side linear sum assignment ----------------------- #
# TODO(synk): linear_sum_assignment (Hungarian algorithm) is a sequential,
# data-dependent combinatorial algorithm with no clean Pallas equivalent; it
# runs on the host (scipy if available, numpy fallback) on the Pallas cost.

def _linear_sum_assignment_np(cost):
    """Jonker-Volgenant / Hungarian (square or n<=m rectangular) in numpy."""
    cost = np.asarray(cost, dtype=np.float64)
    n, m = cost.shape
    assert n <= m
    INF = 1e18
    u = np.zeros(n + 1)
    v = np.zeros(m + 1)
    p = np.zeros(m + 1, dtype=np.int64)    # p[j]: row (1-based) assigned to col j
    way = np.zeros(m + 1, dtype=np.int64)
    for i in range(1, n + 1):
        p[0] = i
        j0 = 0
        minv = np.full(m + 1, INF)
        used = np.zeros(m + 1, dtype=bool)
        while True:
            used[j0] = True
            i0 = p[j0]
            delta = INF
            j1 = -1
            for j in range(1, m + 1):
                if not used[j]:
                    cur = cost[i0 - 1, j - 1] - u[i0] - v[j]
                    if cur < minv[j]:
                        minv[j] = cur
                        way[j] = j0
                    if minv[j] < delta:
                        delta = minv[j]
                        j1 = j
            for j in range(m + 1):
                if used[j]:
                    u[p[j]] += delta
                    v[j] -= delta
                else:
                    minv[j] -= delta
            j0 = j1
            if p[j0] == 0:
                break
        while True:
            j1 = way[j0]
            p[j0] = p[j1]
            j0 = j1
            if j0 == 0:
                break
    col_for_row = np.zeros(n, dtype=np.int64)
    for j in range(1, m + 1):
        if p[j] > 0:
            col_for_row[p[j] - 1] = j - 1
    return np.arange(n, dtype=np.int64), col_for_row


def _lsa(cost_2d):
    if _scipy_lsa is not None:
        xx, yy = _scipy_lsa(cost_2d)
        return np.asarray(xx, dtype=np.int64), np.asarray(yy, dtype=np.int64)
    return _linear_sum_assignment_np(cost_2d)


# ------------------------------ matcher module ------------------------------ #

class HungarianMatcher:
    """JAX/Pallas port of the PyTorch HungarianMatcher forward pass."""

    def __init__(self, cost_type="L2"):
        self.cost_type = cost_type

    def __call__(self, outputs, targets):
        # outputs, targets: [B, K, H*W]
        cost_mask = compute_cost_matrix(outputs, targets, self.cost_type)
        cost_np = np.asarray(jax.device_get(cost_mask))
        inds, inds2 = [], []
        for i in range(cost_np.shape[0]):
            xx, yy = _lsa(cost_np[i])
            inds.append(xx)
            inds2.append(yy)
        idx_dtype = jnp.int64 if jax.config.jax_enable_x64 else jnp.int32
        inds = jnp.asarray(np.stack(inds), dtype=idx_dtype)
        inds2 = jnp.asarray(np.stack(inds2), dtype=idx_dtype)
        return inds, inds2


# ----------------------------------- main ----------------------------------- #

if __name__ == "__main__":
    key = jax.random.PRNGKey(0)
    B, K, H, W = 2, 8, 16, 16            # outputs/targets: [b, k, h*w]
    D = H * W
    k1, k2 = jax.random.split(key)
    outputs = jax.random.uniform(k1, (B, K, D), dtype=jnp.float32)
    targets = jax.random.uniform(k2, (B, K, D), dtype=jnp.float32)

    # --- L2 cost kernel + sanity vs pure-JAX reference ---------------------- #
    cost_l2 = compute_cost_matrix(outputs, targets, "L2")
    jax.block_until_ready(cost_l2)
    assert cost_l2.shape == (B, K, K)
    ref_l2 = jnp.sqrt(jnp.sum((outputs[:, :, None, :] - targets[:, None, :, :]) ** 2,
                              axis=-1))
    assert float(jnp.max(jnp.abs(cost_l2 - ref_l2))) < 1e-1

    # --- cosine cost kernel -------------------------------------------------- #
    cost_cos = compute_cost_matrix(outputs, targets, "cosine")
    jax.block_until_ready(cost_cos)
    na = jnp.linalg.norm(outputs, axis=-1)[:, :, None]
    nb = jnp.linalg.norm(targets, axis=-1)[:, None, :]
    ref_cos = -1.0 * (jnp.einsum("bid,bjd->bij", outputs, targets)
                      / (na + 1e-6) / (nb + 1e-6))
    assert float(jnp.max(jnp.abs(cost_cos - ref_cos))) < 5e-2

    # --- full forward (Pallas cost + host Hungarian assignment) ------------- #
    matcher = HungarianMatcher(cost_type="L2")
    inds, inds2 = matcher(outputs, targets)
    jax.block_until_ready((inds, inds2))

    # Sanity: valid permutation per batch element.
    assert inds.shape == (B, K) and inds2.shape == (B, K)
    for b in range(B):
        assert sorted(np.asarray(inds2[b]).tolist()) == list(range(K))

    print("KERNEL_OK")
</pallas_src>

<mosaic_0001>
module attributes {stable_mosaic.version = 11 : i64} {
  func.func @kernel(%arg0: i32, %arg1: i32, %arg2: memref<1x8x256xf32, #tpu.memory_space<vmem>>, %arg3: memref<1x8x256xf32, #tpu.memory_space<vmem>>, %arg4: memref<1x8x8xf32, #tpu.memory_space<vmem>>, %arg5: memref<1x8x1xf32, #tpu.memory_space<vmem>>, %arg6: memref<1x8x1xf32, #tpu.memory_space<vmem>>) attributes {dimension_semantics = [#tpu.dimension_semantics<parallel>, #tpu.dimension_semantics<arbitrary>], iteration_bounds = array<i64: 2, 1>, scalar_prefetch = 0 : i64, scratch_operands = 2 : i64, tpu.core_type = #tpu.core_type<tc>, window_params = [{transform_indices = @transform_0, window_bounds = array<i64: 1, 8, 256>}, {transform_indices = @transform_1, window_bounds = array<i64: 1, 8, 256>}, {transform_indices = @transform_2, window_bounds = array<i64: 1, 8, 8>}]} {
    %c0_i32 = arith.constant 0 : i32
    %0 = arith.cmpi eq, %arg1, %c0_i32 : i32
    %1 = arith.extui %0 : i1 to i32
    %c0_i32_0 = arith.constant 0 : i32
    %2 = arith.cmpi ne, %1, %c0_i32_0 : i32
    scf.if %2 {
      %cst_28 = arith.constant 0.000000e+00 : f32
      %24 = vector.broadcast %cst_28 : f32 to vector<1x8x8xf32>
      %c0_29 = arith.constant 0 : index
      %c0_30 = arith.constant 0 : index
      %c0_31 = arith.constant 0 : index
      %25 = vector.load %arg4[%c0_29, %c0_30, %c0_31] : memref<1x8x8xf32, #tpu.memory_space<vmem>>, vector<1x8x8xf32>
      tpu.vector_store %arg4[%c0_29, %c0_30, %c0_31], %24 {strides = array<i32>} : memref<1x8x8xf32, #tpu.memory_space<vmem>>, vector<1x8x8xf32>,
      %cst_32 = arith.constant 0.000000e+00 : f32
      %26 = vector.broadcast %cst_32 : f32 to vector<1x8x1xf32>
      %c0_33 = arith.constant 0 : index
      %c0_34 = arith.constant 0 : index
      %c0_35 = arith.constant 0 : index
      %27 = vector.load %arg5[%c0_33, %c0_34, %c0_35] : memref<1x8x1xf32, #tpu.memory_space<vmem>>, vector<1x8x1xf32>
      tpu.vector_store %arg5[%c0_33, %c0_34, %c0_35], %26 {strides = array<i32>} : memref<1x8x1xf32, #tpu.memory_space<vmem>>, vector<1x8x1xf32>,
      %cst_36 = arith.constant 0.000000e+00 : f32
      %28 = vector.broadcast %cst_36 : f32 to vector<1x8x1xf32>
      %c0_37 = arith.constant 0 : index
      %c0_38 = arith.constant 0 : index
      %c0_39 = arith.constant 0 : index
      %29 = vector.load %arg6[%c0_37, %c0_38, %c0_39] : memref<1x8x1xf32, #tpu.memory_space<vmem>>, vector<1x8x1xf32>
      tpu.vector_store %arg6[%c0_37, %c0_38, %c0_39], %28 {strides = array<i32>} : memref<1x8x1xf32, #tpu.memory_space<vmem>>, vector<1x8x1xf32>,
    } else {
    }
    %c0 = arith.constant 0 : index
    %c0_1 = arith.constant 0 : index
    %c0_2 = arith.constant 0 : index
    %3 = vector.load %arg2[%c0, %c0_1, %c0_2] : memref<1x8x256xf32, #tpu.memory_space<vmem>>, vector<1x8x256xf32>
    %c0_3 = arith.constant 0 : index
    %c0_4 = arith.constant 0 : index
    %c0_5 = arith.constant 0 : index
    %4 = vector.load %arg3[%c0_3, %c0_4, %c0_5] : memref<1x8x256xf32, #tpu.memory_space<vmem>>, vector<1x8x256xf32>
    %c0_6 = arith.constant 0 : index
    %c0_7 = arith.constant 0 : index
    %c0_8 = arith.constant 0 : index
    %5 = vector.load %arg4[%c0_6, %c0_7, %c0_8] : memref<1x8x8xf32, #tpu.memory_space<vmem>>, vector<1x8x8xf32>
    "tpu.trace_start"() <{level = 10 : i32, message = "bid,bjd->bij"}> : () -> ()
    %cst = arith.constant dense<0.000000e+00> : vector<1x8x8xf32>
    %6 = tpu.matmul %3, %4, %cst {dimension_numbers = #tpu.dot_dimension_numbers<[2], [2], [1], [1], [0, 0, 0, 1, 1, 1], [0], [0]>} : vector<1x8x256xf32>, vector<1x8x256xf32>, vector<1x8x8xf32> -> vector<1x8x8xf32>
    "tpu.trace_stop"() : () -> ()
    %7 = arith.addf %5, %6 : vector<1x8x8xf32>
    %c0_9 = arith.constant 0 : index
    %c0_10 = arith.constant 0 : index
    %c0_11 = arith.constant 0 : index
    %8 = vector.load %arg4[%c0_9, %c0_10, %c0_11] : memref<1x8x8xf32, #tpu.memory_space<vmem>>, vector<1x8x8xf32>
    tpu.vector_store %arg4[%c0_9, %c0_10, %c0_11], %7 {strides = array<i32>} : memref<1x8x8xf32, #tpu.memory_space<vmem>>, vector<1x8x8xf32>,
    %c0_12 = arith.constant 0 : index
    %c0_13 = arith.constant 0 : index
    %c0_14 = arith.constant 0 : index
    %9 = vector.load %arg5[%c0_12, %c0_13, %c0_14] : memref<1x8x1xf32, #tpu.memory_space<vmem>>, vector<1x8x1xf32>
    %10 = arith.mulf %3, %3 : vector<1x8x256xf32>
    %cst_15 = arith.constant dense<0.000000e+00> : vector<1x8xf32>
    %11 = vector.multi_reduction <add>, %10, %cst_15 [2] : vector<1x8x256xf32> to vector<1x8xf32>
    %12 = vector.shape_cast %11 : vector<1x8xf32> to vector<1x8x1xf32>
    %13 = arith.addf %9, %12 : vector<1x8x1xf32>
    %c0_16 = arith.constant 0 : index
    %c0_17 = arith.constant 0 : index
    %c0_18 = arith.constant 0 : index
    %14 = vector.load %arg5[%c0_16, %c0_17, %c0_18] : memref<1x8x1xf32, #tpu.memory_space<vmem>>, vector<1x8x1xf32>
    tpu.vector_store %arg5[%c0_16, %c0_17, %c0_18], %13 {strides = array<i32>} : memref<1x8x1xf32, #tpu.memory_space<vmem>>, vector<1x8x1xf32>,
    %c0_19 = arith.constant 0 : index
    %c0_20 = arith.constant 0 : index
    %c0_21 = arith.constant 0 : index
    %15 = vector.load %arg6[%c0_19, %c0_20, %c0_21] : memref<1x8x1xf32, #tpu.memory_space<vmem>>, vector<1x8x1xf32>
    %16 = arith.mulf %4, %4 : vector<1x8x256xf32>
    %cst_22 = arith.constant dense<0.000000e+00> : vector<1x8xf32>
    %17 = vector.multi_reduction <add>, %16, %cst_22 [2] : vector<1x8x256xf32> to vector<1x8xf32>
    %18 = vector.shape_cast %17 : vector<1x8xf32> to vector<1x8x1xf32>
    %19 = arith.addf %15, %18 : vector<1x8x1xf32>
    %c0_23 = arith.constant 0 : index
    %c0_24 = arith.constant 0 : index
    %c0_25 = arith.constant 0 : index
    %20 = vector.load %arg6[%c0_23, %c0_24, %c0_25] : memref<1x8x1xf32, #tpu.memory_space<vmem>>, vector<1x8x1xf32>
    tpu.vector_store %arg6[%c0_23, %c0_24, %c0_25], %19 {strides = array<i32>} : memref<1x8x1xf32, #tpu.memory_space<vmem>>, vector<1x8x1xf32>,
    %c0_i32_26 = arith.constant 0 : i32
    %21 = arith.cmpi eq, %arg1, %c0_i32_26 : i32
    %22 = arith.extui %21 : i1 to i32
    %c0_i32_27 = arith.constant 0 : i32
    %23 = arith.cmpi ne, %22, %c0_i32_27 : i32
    scf.if %23 {
      %c0_28 = arith.constant 0 : index
      %c0_29 = arith.constant 0 : index
      %c0_30 = arith.constant 0 : index
      %24 = vector.load %arg5[%c0_28, %c0_29, %c0_30] : memref<1x8x1xf32, #tpu.memory_space<vmem>>, vector<1x8x1xf32>
      %c0_31 = arith.constant 0 : index
      %c0_32 = arith.constant 0 : index
      %c0_33 = arith.constant 0 : index
      %25 = vector.load %arg6[%c0_31, %c0_32, %c0_33] : memref<1x8x1xf32, #tpu.memory_space<vmem>>, vector<1x8x1xf32>
      %26 = tpu.transpose %25, [0, 2, 1] : vector<1x8x1xf32> -> vector<1x1x8xf32>
      %27 = vector.broadcast %24 : vector<1x8x1xf32> to vector<1x8x8xf32>
      %28 = vector.broadcast %26 : vector<1x1x8xf32> to vector<1x8x8xf32>
      %29 = arith.addf %27, %28 : vector<1x8x8xf32>
      %c0_34 = arith.constant 0 : index
      %c0_35 = arith.constant 0 : index
      %c0_36 = arith.constant 0 : index
      %30 = vector.load %arg4[%c0_34, %c0_35, %c0_36] : memref<1x8x8xf32, #tpu.memory_space<vmem>>, vector<1x8x8xf32>
      %cst_37 = arith.constant 2.000000e+00 : f32
      %31 = vector.broadcast %cst_37 : f32 to vector<1x8x8xf32>
      %32 = arith.mulf %31, %30 : vector<1x8x8xf32>
      %33 = arith.subf %29, %32 : vector<1x8x8xf32>
      %cst_38 = arith.constant 0.000000e+00 : f32
      %34 = vector.broadcast %cst_38 : f32 to vector<1x8x8xf32>
      %35 = arith.maximumf %33, %34 : vector<1x8x8xf32>
      %36 = math.sqrt %35 : vector<1x8x8xf32>
      %c0_39 = arith.constant 0 : index
      %c0_40 = arith.constant 0 : index
      %c0_41 = arith.constant 0 : index
      %37 = vector.load %arg4[%c0_39, %c0_40, %c0_41] : memref<1x8x8xf32, #tpu.memory_space<vmem>>, vector<1x8x8xf32>
      tpu.vector_store %arg4[%c0_39, %c0_40, %c0_41], %36 {strides = array<i32>} : memref<1x8x8xf32, #tpu.memory_space<vmem>>, vector<1x8x8xf32>,
    } else {
    }
    return
  }
  func.func @transform_0(%arg0: i32, %arg1: i32) -> (i32, i32, i32) {
    %c0_i32 = arith.constant 0 : i32
    %c0_i32_0 = arith.constant 0 : i32
    return %arg0, %c0_i32, %arg1 : i32, i32, i32
  }
  func.func @transform_1(%arg0: i32, %arg1: i32) -> (i32, i32, i32) {
    %c0_i32 = arith.constant 0 : i32
    %c0_i32_0 = arith.constant 0 : i32
    return %arg0, %c0_i32, %arg1 : i32, i32, i32
  }
  func.func @transform_2(%arg0: i32, %arg1: i32) -> (i32, i32, i32) {
    %c0_i32 = arith.constant 0 : i32
    %c0_i32_0 = arith.constant 0 : i32
    %c0_i32_1 = arith.constant 0 : i32
    return %arg0, %c0_i32, %c0_i32_0 : i32, i32, i32
  }
}

</mosaic_0001>

<bundles_post_ra>
// kernel: tpu_custom_call.1
= control target key start
LH: loop header
LB: loop body
LE: loop exit
PB: predicated region body
PF: predicated region fallthrough
CT: control target
= control target key end

     0   :  { %7 = vsyncpa [#allocation5], 0  ;;  %s884_s0 = inlined_call_operand.hbm [shape: f32[2,8,256], index: 0, kind: input, shape index: {}]   ;;  %s885_s1 = inlined_call_operand.hbm [shape: f32[2,8,256], index: 1, kind: input, shape index: {}]   ;;  %s886_s2 = inlined_call_operand.hbm [shape: f32[2,8,8], index: 2, kind: output, shape index: {}]  }
   0x1   :  { %9 = vsyncpa [#allocation5 + $0x1], 0 }
   0x2   :  { %10 = vsyncpa [#allocation8], 0 }
   0x3   :  { %12 = vsyncpa [#allocation8 + $0x1], 0 }
   0x4   :  { %13 = vsyncpa [#allocation6], 0 }
   0x5   :  { %15 = vsyncpa [#allocation6 + $0x1], 0  ;;  %s740_s9 = smov 0   ;;  %s742_s10 = smov 0  }
   0x6   :  { %s744_s11 = smov 0   ;;  %s746_s12 = smov 0  }
   0x7   :  { %s748_s13 = smov 0   ;;  %s750_s14 = smov 0  }
   0x8 LB: > { %s482_s15 = sadd.s32 4294967295, %s721_s14   ;;  %s483_s16 = sadd.s32 4294967294, %s721_s14   ;;  %s721_s14 = sphi %s750_s14, %s21_s14   ;;  %s717_s13 = sphi %s748_s13, %s895_s13   ;;  %s713_s12 = sphi %s746_s12, %s894_s12   ;;  %s709_s11 = sphi %s744_s11, %s893_s11   ;;  %s705_s10 = sphi %s742_s10, %s892_s10   ;;  %s701_s9 = sphi %s740_s9, %s891_s9  }
   0x9   : > { %s33_s17 = sadd.s32 1, %s717_s13  ;;  %s42_s18 = sadd.s32 1, %s709_s11 }
   0xa   : > { %p35_p0 = scmp.ge.s32.totalorder %s33_s17, 2  ;;  %p49_p1 = scmp.ne.s32.totalorder %s709_s11, %s705_s10 }
   0xb   : > { %p50_p2 = scmp.eq.s32.totalorder %s721_s14, 0  ;;  %p55_p3 = scmp.ne.s32.totalorder %s705_s10, %s701_s9 }
   0xc   : > { %s897_s17 = smov (%p35_p0, %s33_s17), 0  ;;  %p56_p5 = scmp.eq.s32.totalorder %s482_s15, 0 }
   0xd   : > { %p781_p4 = por %p50_p2, %p49_p1  ;;  %s37_s20 = ssub.s32 %s717_s13, %s897_s17 }
   0xe   : > { %p107_p6 = scmp.eq.s32.totalorder %s482_s15, 1  ;;  %p40_p7 = scmp.eq.s32.totalorder %s37_s20, 0 }
   0xf   : > { %p787_p8 = por %p56_p5, %p55_p3  ;;  %p113_p10 = scmp.eq.s32.totalorder %s483_s16, 1 }
  0x10   : > { %p791_p9 = por %p107_p6, %p49_p1  ;;  %p485_p12 = scmp.ge.s32.totalorder %s721_s14, 2 }
  0x11   : > { %s796_s23 = scalar_select %p40_p7, %s709_s11, %s42_s18  }
  0x12   : > { %p798_p11 = por %p113_p10, %p55_p3  ;;  %p519_p13 = scmp.lt.s32.totalorder %s721_s14, 2 }
  0x13   : > { %s133_s25 = sand.u32 1, %s709_s11   ;;  %s500_s27 = sshll.u32 %s717_s13, 4 }
  0x14   : > { %s486_s26 = sshll.u32 %s133_s25, 4  ;;  %s144_s30 = scalar_lea.hbm %s884_s0, %s500_s27 }
  0x15   : > { %s137_s3 = scalar_lea.vmem [#allocation4], %s486_s26  ;;  %s146_s5 = sshll.u32 %s144_s30, 4  ;;  %s147_s5 = int_to_ptr.hbm [resolvable:$true] %s146_s5 }
  0x16   : > { %s148_s4 = sshll.u32 %s137_s3, 4  ;;  %p509_p0 = pnand %p519_p13, %p781_p4  ;;  %s149_s4 = int_to_ptr.vmem [resolvable:$true] %s148_s4 }
  0x17   : > { %p492_p1 = scmp.ge.s32.totalorder %s721_s14, 1  ;;  %p175_p2 = scmp.lt.s32.totalorder %s721_s14, 3 }
  0x18   : > { %s134_s6 = scalar_lea.sflag [#allocation5], %s133_s25  ;;  %s166_s15 = scalar_lea.hbm %s885_s1, %s500_s27 }
  0x19   : > { %511 = dma.hbm_to_vmem [thread:$0]  (!%p509_p0), %s147_s5, 256, %s149_s4, %s134_s6  }
  0x1a   : > { %p176_p3 = pnand %p492_p1, %p175_p2  ;;  %s159_s16 = scalar_lea.vmem [#allocation7], %s486_s26 }
  0x1b   : > { %s170_s18 = sshll.u32 %s159_s16, 4  ;;  %s168_s20 = sshll.u32 %s166_s15, 4  ;;  %s171_s18 = int_to_ptr.vmem [resolvable:$true] %s170_s18  ;;  %s169_s20 = int_to_ptr.hbm [resolvable:$true] %s168_s20 }
  0x1c   : > { %s156_s28 = scalar_lea.sflag [#allocation8], %s133_s25  ;;  %179 = sbr.rel (%p176_p3) target bundleno = 417 (0x1a1), region = 28 }
  0x1d   : > { %514 = dma.hbm_to_vmem [thread:$0]  (!%p509_p0), %s169_s20, 256, %s171_s18, %s156_s28  }
  0x1e   : > { %s817_s19 = sand.u32 (!%p176_p3), 1, %s705_s10  }
  0x1f   : > { %s493_s29 = sshll.u32 (!%p176_p3), %s817_s19, 4  ;;  %s182_s30 = scalar_lea.sflag (!%p176_p3), [#allocation5], %s817_s19 }
  0x20   : > { %s185_s3 = scalar_lea.vmem (!%p176_p3), [#allocation4], %s493_s29 }
  0x21   : > { %688 = dma.done.wait (%p787_p8), %s182_s30, 256  }
  0x22   : > { %690 = vsyncadd (%p787_p8), %s182_s30, 4294967040  ;;  %s192_s26 = scalar_lea.sflag [#allocation8], %s817_s19  ;;  %s195_s25 = scalar_lea.vmem [#allocation7], %s493_s29 }
  0x23   : > { %692 = dma.done.wait (%p787_p8), %s192_s26, 256  }
  0x24   : > { %694 = vsyncadd (%p787_p8), %s192_s26, 4294967040  ;;  %vm230_vm0 = vcmask 7168   ;;  %v723_v0 = vmov 0.0   ;;  %v233_v1 = vld [vmem:[%s185_s3] sm:$0xff]  ;;  %v234_v2 = vld [vmem:[%s185_s3 + $0x8] sm:$0xff]  ;;  %v724_v11 = vmov 0  }
  0x25   : > { %231 = vst.msk [vmem:[#allocation2] sm:$0xff] %vm230_vm0, %v723_v0  ;;  %v235_v3 = vld [vmem:[%s195_s25] sm:$0xff]  ;;  %v282_v4 = vmul.f32 %v233_v1, %v233_v1  ;;  %v283_v5 = vmul.f32 %v234_v2, %v234_v2  ;;  %v236_v6 = vld [vmem:[%s195_s25 + $0x8] sm:$0xff]  ;;  %571 = vset.pattern.permute.xlu1 %v724_v11  ;;  %572 = vset.pattern.permute.xlu0 %v724_v11  ;;  %s495_s21 = sshll.u32 %s817_s19, 3  ;;  %vm228_vm1 = vcmask 64512   ;;  %s497_s4 = sshll.u32 %s713_s12, 3 }
  0x26   : > { %232 = vst.msk [vmem:[#allocation3] sm:$0xff] %vm230_vm0, %v723_v0  ;;  %253 = vmatpush.xpose.msra.mxu0 %v235_v3  ;;  %273 = vmatpush.xpose.msra.mxu1 %v236_v6  ;;  %v291_v8 = vmul.f32 %v235_v3, %v235_v3  ;;  %v292_v9 = vmul.f32 %v236_v6, %v236_v6  ;;  %s835_s27 = scalar_lea.vmem [#allocation9], %s495_s21  ;;  %s370_s7 = scalar_lea.hbm %s886_s2, %s497_s4 }
  0x27   : > { %v284_v7 = vadd.f32 %v283_v5, %v282_v4  ;;  %229 = vst.msk [vmem:[%s835_s27] sm:$0xff] %vm228_vm1, %v723_v0  ;;  %s372_s8 = sshll.u32 %s835_s27, 4  ;;  %s374_s15 = sshll.u32 %s370_s7, 4  ;;  %s373_s8 = int_to_ptr.vmem [resolvable:$true] %s372_s8  ;;  %s375_s15 = int_to_ptr.hbm [resolvable:$true] %s374_s15 }
  0x28   : > { %v293_v10 = vadd.f32 %v292_v9, %v291_v8  ;;  %s360_s12 = scalar_lea.sflag [#allocation6], %s817_s19  ;;  %s649_s16 = sshra.s32 %s375_s15, 4  ;;  %s650_s16 = int_to_ptr.hbm [resolvable:$true] %s649_s16 }
  0x29   : > { %254 = vmatmul.f32.vlgmr.msra.gmra.mxu0 %v233_v1  ;;  %285 = vadd.xlane.f32.xlu0 %v284_v7  ;;  %s651_s18 = scalar_lea.hbm %s650_s16, 8  ;;  %s655_s29 = scalar_lea.hbm %s886_s2, 16 }
  0x2a   : > { %274 = vmatmul.f32.vlgmr.msra.gmra.mxu1 %v234_v2  ;;  %p652_p4 = scmp.ne.s32.totalorder %s650_s16, %s651_s18  ;;  %p656_p7 = scmp.lt.s32.totalorder %s650_s16, %s886_s2 }
  0x2b   : > { %p657_p8 = scmp.lt.s32.totalorder %s655_s29, %s651_s18 }
  0x2c   : > { %v281_v12 = vld [vmem:[#allocation2] sm:$0xff]  ;;  %p653_p5 = pnand %p652_p4, %p791_p9 }
  0x2d   : > { %v290_v15 = vld [vmem:[#allocation3] sm:$0xff]  ;;  %p658_p10 = por %p657_p8, %p656_p7 }
  0x2e   : > { %v237_v23 = vld [vmem:[%s835_s27] sm:$0xff]  ;;  %p654_p6 = pneg %p653_p5 }
  0x30   : > { %p659_p13 = pnand %p658_p10, %p654_p6 }
  0x31   : > { %294 = vadd.xlane.f32.xlu0 %v293_v10 }
  0x9c   : > { %v286_v13 = vpop.xlane.xlu0 %285 }
  0x9d   : > { %v287_v14 = vadd.f32 %v286_v13, %v281_v12 }
  0x9f   : > { %289 = vst.msk [vmem:[#allocation2] sm:$0xff] %vm230_vm0, %v287_v14 }
  0xa4   : > { %v295_v16 = vpop.xlane.xlu0 %294 }
  0xa5   : > { %v296_v17 = vadd.f32 %v295_v16, %v290_v15 }
  0xa6   : > { %v301_v18 = vld [vmem:[#allocation2] sm:$0xff]  ;;  %v255_v20 = vpop.f32.mrf.mxu0 }
  0xa7   : > { %337 = vperm.xlu1 %571, %v301_v18   ;;  %297 = vst.msk [vmem:[#allocation3] sm:$0xff] %vm230_vm0, %v296_v17  ;;  %v275_v21 = vpop.f32.mrf.mxu1 }
  0xa8   : > { %v276_v22 = vadd.f32 %v275_v21, %v255_v20 }
  0xaa   : > { %v278_v24 = vadd.f32 %v276_v22, %v237_v23 }
  0xac   : > { %280 = vst.msk [vmem:[%s835_s27] sm:$0xff] %vm228_vm1, %v278_v24 }
  0xae   : > { %v302_v19 = vld [vmem:[#allocation3] sm:$0xff] }
  0xb3   : > { %v342_v26 = vld [vmem:[%s835_s27] sm:$0xff] }
  0xb4   : > { %v343_v29 = vmul.f32 2.0, %v342_v26 }
  0xdc   : > { %303 = vxpose.xlu1.b32.start.end [1/1] (short) (narrow) %v302_v19, 8 }
 0x119   : > { %v338_v25 = vpop.permute.xlu1 %337 }
 0x180   : > { %v319_v27 = vpop.trf.xlu1 }
 0x181   : > { %v340_v28 = vperm.slane %v319_v27, 0 }
 0x183   : > { %v341_v30 = vadd.f32 %v340_v28, %v338_v25 }
 0x185   : > { %v344_v31 = vsub.f32 %v341_v30, %v343_v29 }
 0x187   : > { %v345_v32 = vmax.f32 %v344_v31, 0.0 }
 0x189   : > { %573 = vrsqrt.f32 %v345_v32  ;;  %vm353_vm2 = vcmp.eq.f32.partialorder %v345_v32, inf  ;;  %v356_v40 = vand.u32 2147483648, %v345_v32  ;;  %vm355_vm3 = vcmp.eq.f32.partialorder %v345_v32, 0.0 }
 0x18f   : > { %v574_v33 = vpop.eup %573 }
 0x190   : > { %v347_v34 = vmul.f32 %v574_v33, %v345_v32 }
 0x192   : > { %v348_v35 = vmul.f32 %v574_v33, %v347_v34 }
 0x194   : > { %v349_v36 = vmul.f32 0.5, %v348_v35 }
 0x196   : > { %v350_v37 = vsub.f32 1.5, %v349_v36 }
 0x198   : > { %v351_v38 = vmul.f32 %v574_v33, %v350_v37 }
 0x19a   : > { %v352_v39 = vmul.f32 %v351_v38, %v345_v32 }
 0x19c   : > { %v354_v41 = vsel %vm353_vm2, %v345_v32, %v352_v39 }
 0x19d   : > { %v357_v42 = vsel %vm355_vm3, %v356_v40, %v354_v41 }
 0x19e   : > { %358 = vst.msk [vmem:[%s835_s27] sm:$0xff] %vm228_vm1, %v357_v42 }
 0x19f   : > { %662 = shalt.err (!%p659_p13)
}
 0x1a0   : > { %506 = dma.vmem_to_hbm [thread:$0]  (%p791_p9), %s373_s8, 128, %s375_s15, %s360_s12  }
 0x1a1 PF: > { %s386_s19 = sand.u32 1, %s701_s9   ;;  %p516_p0 = pnand %p485_p12, %p798_p11 }
 0x1a2   : > { %s387_s26 = scalar_lea.sflag [#allocation6], %s386_s19 }
 0x1a3   : > { %p517_p1 = pneg %p516_p0 }
 0x1a5   : > { %696 = dma.done.wait (%p517_p1), %s387_s26, 128  }
 0x1a6   : > { %698 = vsyncadd (%p517_p1), %s387_s26, 4294967168  ;;  %s21_s14 = sadd.s32 1, %s721_s14   ;;  %s891_s9 = smov %s705_s10 }
 0x1a7   : > { %p18_p2 = scmp.ge.s32.totalorder %s21_s14, 4   ;;  %s892_s10 = smov %s709_s11 }
 0x1a8   : > { %s893_s11 = smov %s796_s23  ;;  %s894_s12 = smov %s717_s13 }
 0x1a9   : > { %s895_s13 = smov %s897_s17  ;;  %20 = sbr.rel (!%p18_p2) target bundleno = 8 (0x8), region = 94 }
 0x1ae   :  { %393 = vsyncpa [#allocation5], 1 }
 0x1af   :  { %395 = vsyncpa [#allocation5 + $0x1], 1 }
 0x1b0   :  { %396 = vsyncpa [#allocation8], 1 }
 0x1b1   :  { %398 = vsyncpa [#allocation8 + $0x1], 1 }
 0x1b2   :  { %399 = vsyncpa [#allocation6], 1 }
 0x1b3   :  { %401 = vsyncpa [#allocation6 + $0x1], 1 }

</bundles_post_ra>
